<compile_context>
chip_gen: v7x
topology: tpu7x:2x2x1
jax: 0.10.0
libtpu: 0.0.40
codegen_flags: <defaults>
</compile_context>

<pallas_src>
import functools

import jax
import jax.numpy as jnp
from jax.experimental import pallas as pl
from jax.experimental.pallas import tpu as pltpu


def _round_up(x, m):
    return ((x + m - 1) // m) * m


def _xl_pos_emb_kernel(inv_ref, out_ref, *, tp, half, start, clamp_len):
    # inv_ref: [1, half]   float32 inverse frequencies (resident across steps)
    # out_ref: [tp, 2*half] output tile for grid step i (rows i*tp .. i*tp+tp-1)
    i = pl.program_id(0)
    # Per-tile base position: pos[row] = start - (i*tp + row), descending.
    base = jnp.float32(start) - (i * tp).astype(jnp.float32)
    row = jax.lax.broadcasted_iota(jnp.int32, (tp, half), 0).astype(jnp.float32)
    pos = base - row                                  # [tp, half]
    if clamp_len > 0:
        pos = jnp.minimum(pos, jnp.float32(clamp_len))
    sinusoid = pos * inv_ref[...]                     # broadcast [1,half] -> [tp,half]
    out_ref[:, :half] = jnp.sin(sinusoid).astype(out_ref.dtype)
    out_ref[:, half:] = jnp.cos(sinusoid).astype(out_ref.dtype)


class XLPositionalEmbedding:
    """JAX/Pallas port of neural_sp XLPositionalEmbedding (inference forward)."""

    # Below this many output elements the pallas_call launch/DMA overhead
    # dominates; use the fused pure-JAX path instead.
    _MIN_PALLAS_ELEMS = 64 * 1024

    def __init__(self, d_model, dropout=0.0, out_dtype=jnp.float32):
        assert d_model % 2 == 0
        self.d_model = d_model
        self.dropout_p = dropout          # identity at inference
        self.out_dtype = out_dtype        # bf16 recommended on v5e consumers
        # inv_freq = 1 / 10000 ** (arange(0, d_model, 2) / d_model)
        self.inv_freq = 1.0 / (
            10000.0 ** (jnp.arange(0.0, d_model, 2.0, dtype=jnp.float32) / d_model)
        )

    # ---- pure-JAX fallback (small shapes / non-128-aligned half) ------------
    def _jax_path(self, P, start, clamp_len):
        pos_idxs = jnp.float32(start) - jnp.arange(P, dtype=jnp.float32)
        if clamp_len > 0:
            pos_idxs = jnp.minimum(pos_idxs, jnp.float32(clamp_len))
        sinusoid = pos_idxs[:, None] * self.inv_freq[None, :]
        pos_emb = jnp.concatenate([jnp.sin(sinusoid), jnp.cos(sinusoid)], axis=-1)
        return pos_emb.astype(self.out_dtype)

    # ---- Pallas path ---------------------------------------------------------
    def _pallas_path(self, P, start, clamp_len):
        half = self.d_model // 2
        # Tile size: multiple of 8 rows, <= 512, and <= ~4 MiB per output tile
        # so the double-buffered tile stays inside the default scoped VMEM on
        # every generation (v5e 16 MiB, v6e/v7x 32 MiB scoped; v7x 64 MiB phys).
        max_rows_by_vmem = max(8, ((4 << 20) // (self.d_model * 4)) // 8 * 8)
        tp = min(512, max_rows_by_vmem, _round_up(P, 8))

        kernel = functools.partial(
            _xl_pos_emb_kernel, tp=tp, half=half,
            start=float(start), clamp_len=int(clamp_len),
        )
        return pl.pallas_call(
            kernel,
            out_shape=jax.ShapeDtypeStruct((P, self.d_model), self.out_dtype),
            grid=(pl.cdiv(P, tp),),
            in_specs=[pl.BlockSpec((1, half), lambda i: (0, 0))],
            out_specs=pl.BlockSpec((tp, self.d_model), lambda i: (i, 0)),
            compiler_params=pltpu.CompilerParams(
                dimension_semantics=("parallel",)   # 2-TC sharding on v7x
            ),
        )(self.inv_freq.reshape(1, half))

    def __call__(self, xs, mlen=0, clamp_len=-1, zero_center_offset=False,
                 force_pallas=False):
        # xs: [B, L, d_model]; only L is used (as in the PyTorch module).
        L = xs.shape[1]
        P = mlen + L
        half = self.d_model // 2
        # pos_idxs[r] = start - r  (descending), r = 0..P-1
        start = (mlen - 1) if zero_center_offset else (mlen + L - 1)

        lane_dense = (half % 128 == 0)
        big_enough = (P * self.d_model >= self._MIN_PALLAS_ELEMS) or force_pallas
        if lane_dense and big_enough:
            pos_emb = self._pallas_path(P, start, clamp_len)
        else:
            pos_emb = self._jax_path(P, start, clamp_len)

        # dropout: identity at inference (p only applies in training mode)
        return pos_emb[:, None, :]                       # [P, 1, d_model]


def _reference(xs, inv_freq, mlen=0, clamp_len=-1, zero_center_offset=False):
    L = xs.shape[1]
    if zero_center_offset:
        pos_idxs = jnp.arange(mlen - 1, -L - 1, -1.0, dtype=jnp.float32)
    else:
        pos_idxs = jnp.arange(mlen + L - 1, -1, -1.0, dtype=jnp.float32)
    if clamp_len > 0:
        pos_idxs = jnp.minimum(pos_idxs, float(clamp_len))
    sinusoid = jnp.einsum("i,j->ij", pos_idxs, inv_freq)
    pos_emb = jnp.concatenate([jnp.sin(sinusoid), jnp.cos(sinusoid)], axis=-1)
    return pos_emb[:, None, :]


if __name__ == "__main__":
    key = jax.random.PRNGKey(0)

    # --- Pallas kernel path: lane-dense d_model (half = 128), small seq -----
    B, L, d_model, mlen = 2, 8, 256, 8
    xs = jax.random.normal(key, (B, L, d_model), dtype=jnp.float32)
    module = XLPositionalEmbedding(d_model, dropout=0.1)

    out = jax.block_until_ready(module(xs, mlen=mlen, force_pallas=True))
    ref = _reference(xs, module.inv_freq, mlen=mlen)
    assert out.shape == (mlen + L, 1, d_model), out.shape
    assert jnp.allclose(out, ref, atol=1e-5, rtol=1e-5), "mismatch vs reference"

    # clamp + zero_center_offset, still through the Pallas kernel
    out2 = jax.block_until_ready(
        module(xs, mlen=mlen, clamp_len=3, zero_center_offset=True,
               force_pallas=True)
    )
    ref2 = _reference(xs, module.inv_freq, mlen=mlen, clamp_len=3,
                      zero_center_offset=True)
    assert jnp.allclose(out2, ref2, atol=1e-5, rtol=1e-5), "mismatch (clamped)"

    # multi-tile grid (P > TP): exercises the tiled/pipelined path + partial
    # trailing block (P = 528 -> tiles of 512 + 16)
    mlen_big = 520
    out3 = jax.block_until_ready(module(xs, mlen=mlen_big))
    ref3 = _reference(xs, module.inv_freq, mlen=mlen_big)
    assert out3.shape == (mlen_big + L, 1, d_model), out3.shape
    assert jnp.allclose(out3, ref3, atol=1e-3, rtol=1e-3), "mismatch (tiled)"

    # tiny / non-lane-dense d_model routes to the pure-JAX fallback
    d_small = 32
    xs_small = jax.random.normal(key, (B, L, d_small), dtype=jnp.float32)
    module_small = XLPositionalEmbedding(d_small, dropout=0.0)
    out4 = jax.block_until_ready(module_small(xs_small, mlen=4))
    ref4 = _reference(xs_small, module_small.inv_freq, mlen=4)
    assert out4.shape == (4 + L, 1, d_small), out4.shape
    assert jnp.allclose(out4, ref4, atol=1e-5, rtol=1e-5), "mismatch (fallback)"

    print("KERNEL_OK")
</pallas_src>

<mosaic_0001>
module attributes {stable_mosaic.version = 11 : i64} {
  func.func @_xl_pos_emb_kernel(%arg0: i32, %arg1: memref<1x128xf32, #tpu.memory_space<vmem>>, %arg2: memref<16x256xf32, #tpu.memory_space<vmem>>) attributes {dimension_semantics = [#tpu.dimension_semantics<parallel>], iteration_bounds = array<i64: 1>, scalar_prefetch = 0 : i64, scratch_operands = 0 : i64, tpu.core_type = #tpu.core_type<tc>, window_params = [{pipeline_mode = #tpu.pipeline_mode<synchronous>, transform_indices = @transform_0, window_bounds = array<i64: 1, 128>}, {transform_indices = @transform_1, window_bounds = array<i64: 16, 256>}]} {
    %c16_i32 = arith.constant 16 : i32
    %0 = arith.muli %arg0, %c16_i32 : i32
    %1 = arith.sitofp %0 : i32 to f32
    %cst = arith.constant 1.500000e+01 : f32
    %2 = arith.subf %cst, %1 : f32
    %3 = tpu.iota {dimensions = array<i32: 0>} : vector<16x128xi32>
    %4 = arith.sitofp %3 : vector<16x128xi32> to vector<16x128xf32>
    %5 = vector.broadcast %2 : f32 to vector<16x128xf32>
    %6 = arith.subf %5, %4 : vector<16x128xf32>
    %c0 = arith.constant 0 : index
    %c0_0 = arith.constant 0 : index
    %7 = vector.load %arg1[%c0, %c0_0] : memref<1x128xf32, #tpu.memory_space<vmem>>, vector<1x128xf32>
    %8 = vector.broadcast %7 : vector<1x128xf32> to vector<16x128xf32>
    %9 = arith.mulf %6, %8 : vector<16x128xf32>
    %10 = math.sin %9 : vector<16x128xf32>
    %c0_1 = arith.constant 0 : index
    %c0_2 = arith.constant 0 : index
    %11 = vector.load %arg2[%c0_1, %c0_2] : memref<16x256xf32, #tpu.memory_space<vmem>>, vector<16x128xf32>
    tpu.vector_store %arg2[%c0_1, %c0_2], %10 {strides = array<i32>} : memref<16x256xf32, #tpu.memory_space<vmem>>, vector<16x128xf32>,
    %12 = math.cos %9 : vector<16x128xf32>
    %c0_3 = arith.constant 0 : index
    %c128 = arith.constant 128 : index
    %13 = vector.load %arg2[%c0_3, %c128] : memref<16x256xf32, #tpu.memory_space<vmem>>, vector<16x128xf32>
    tpu.vector_store %arg2[%c0_3, %c128], %12 {strides = array<i32>} : memref<16x256xf32, #tpu.memory_space<vmem>>, vector<16x128xf32>,
    return
  }
  func.func @transform_0(%arg0: i32) -> (i32, i32) {
    %c0_i32 = arith.constant 0 : i32
    %c0_i32_0 = arith.constant 0 : i32
    %c0_i32_1 = arith.constant 0 : i32
    return %c0_i32, %c0_i32_0 : i32, i32
  }
  func.func @transform_1(%arg0: i32) -> (i32, i32) {
    %c0_i32 = arith.constant 0 : i32
    %c0_i32_0 = arith.constant 0 : i32
    return %arg0, %c0_i32 : i32, i32
  }
}

</mosaic_0001>

<bundles_post_ra>
// kernel: tpu_custom_call.1
= control target key start
LH: loop header
LB: loop body
LE: loop exit
PB: predicated region body
PF: predicated region fallthrough
CT: control target
= control target key end

     0   :  { %6 = vsyncpa [#allocation3], 0  ;;  %s679_s0 = inlined_call_operand.hbm [shape: f32[1,128], index: 0, kind: input, shape index: {}]   ;;  %s680_s1 = inlined_call_operand.hbm [shape: f32[16,256], index: 1, kind: output, shape index: {}]  }
   0x1   :  { %7 = vsyncpa [#allocation4], 0  ;;  %s567_s6 = smov [#allocation2]   ;;  %s519_s10 = scalar_lea.hbm %s679_s0, 16 }
   0x2   :  { %s14_s7 = sshll.u32 %s567_s6, 4  ;;  %p520_p0 = scmp.ne.s32.totalorder %s679_s0, %s519_s10  ;;  %s15_s7 = int_to_ptr.vmem [resolvable:$true] %s14_s7 }
   0x3   :  { %p523_p1 = scmp.lt.u32.totalorder %s519_s10, %s679_s0 }
   0x5   :  { %p525_p2 = pnand %p523_p1, %p520_p0 }
   0x7   :  { %528 = shalt.err (!%p525_p2)
}
   0x8   :  { %s529_s15 = scalar_lea.vmem %s15_s7, 16  ;;  %s533_s16 = scalar_lea.vmem %s15_s7, 32 }
   0x9   :  { %p530_p3 = scmp.ne.s32.totalorder %s15_s7, %s529_s15  ;;  %p534_p4 = scmp.lt.s32.totalorder %s15_s7, %s15_s7 }
   0xa   :  { %p535_p5 = scmp.lt.s32.totalorder %s533_s16, %s529_s15 }
   0xc   :  { %p536_p6 = por %p535_p5, %p534_p4 }
   0xe   :  { %p537_p7 = pnand %p536_p6, %p530_p3 }
  0x10   :  { %540 = shalt.err (!%p537_p7)
}
  0x11   :  { %17 = dma.hbm_to_vmem [thread:$0]  %s679_s0, 16, %s15_s7, [#allocation3]  }
  0x12   :  { %563 = dma.done.wait [#allocation3], 16  }
  0x13   :  { %564 = vsyncadd [#allocation3], 4294967280  ;;  %v24_v0 = vlaneseq  ;;  %v476_v6 = vld [vmem:[#allocation2] ss:$0 sm:$0xff]  ;;  %v568_v29 = vmov 683565275  }
  0x14   :  { %v569_v31 = vmov 2475754826   ;;  %v570_v33 = vmov 2131351028   ;;  %v571_v35 = vmov 2102212464  }
  0x15   :  { %v25_v1 = vshrl.u32 %v24_v0, 7  ;;  %v572_v37 = vmov 920167782   ;;  %v573_v44 = vmov 1326507024   ;;  %s574_s0 = smov [#allocation5]  }
  0x16   :  { %s464_s19 = sshll.u32 %s574_s0, 4  ;;  %s465_s19 = int_to_ptr.vmem [resolvable:$true] %s464_s19 }
  0x17   :  { %v27_v2 = vcvt.s32.f32 %v25_v1  ;;  %v26_v3 = vadd.s32 8, %v25_v1  ;;  %s541_s20 = scalar_lea.vmem %s465_s19, 512  ;;  %p546_p9 = scmp.lt.s32.totalorder %s465_s19, %s465_s19 }
  0x18   :  { %p542_p8 = scmp.ne.s32.totalorder %s465_s19, %s541_s20  ;;  %p547_p10 = scmp.lt.s32.totalorder %s541_s20, %s541_s20 }
  0x19   :  { %v30_v4 = vsub.f32 15.0, %v27_v2  ;;  %v28_v5 = vcvt.s32.f32 %v26_v3 }
  0x1a   :  { %p548_p11 = por %p547_p10, %p546_p9 }
  0x1b   :  { %v599_v7 = vmul.f32 %v476_v6, %v30_v4  ;;  %v31_v8 = vsub.f32 15.0, %v28_v5 }
  0x1c   :  { %p549_p12 = pnand %p548_p11, %p542_p8 }
  0x1d   :  { %v41_v9 = vand.u32 2147483647, %v599_v7  ;;  %v44_v10 = vand.u32 2139095040, %v599_v7  ;;  %v603_v11 = vmul.f32 %v476_v6, %v31_v8  ;;  %vm43_vm14 = vcmp.lt.s32.totalorder %v599_v7, 0 }
  0x1f   :  { %v45_v12 = vshrl.u32 %v44_v10, 23  ;;  %v48_v13 = vand.u32 8388607, %v41_v9  ;;  %v145_v14 = vand.u32 2147483647, %v603_v11  ;;  %v148_v15 = vand.u32 2139095040, %v603_v11 }
  0x20   :  { %vm42_vm15 = vcmp.le.f32.partialorder %v41_v9, 0.7853982 }
  0x21   :  { %v477_v16 = vadd.s32 4294967169, %v45_v12  ;;  %v149_v17 = vshrl.u32 %v148_v15, 23  ;;  %v49_v19 = vor.u32 8388608, %v48_v13  ;;  %v611_v21 = vand.u32 8388607, %v145_v14 }
  0x23   :  { %v51_v18 = vadd.s32 1, %v477_v16  ;;  %v481_v20 = vadd.s32 4294967169, %v149_v17  ;;  %v613_v26 = vshll.u32 %v49_v19, 8  ;;  %v153_v27 = vor.u32 8388608, %v611_v21 }
  0x25   :  { %vm52_vm0 = vcmp.gt.s32.totalorder %v51_v18, 0  ;;  %v155_v23 = vadd.s32 1, %v481_v20 }
  0x26   :  { %v53_v22 = vsel %vm52_vm0, %v51_v18, 0  ;;  %vm147_vm0 = vcmp.lt.s32.totalorder %v603_v11, 0 }
  0x27   :  { %v54_v24 = vshrl.u32 %v53_v22, 5  ;;  %v55_v25 = vand.u32 31, %v53_v22  ;;  %vm156_vm1 = vcmp.gt.s32.totalorder %v155_v23, 0 }
  0x28   :  { %v157_v49 = vsel %vm156_vm1, %v155_v23, 0  ;;  %vm146_vm1 = vcmp.le.f32.partialorder %v145_v14, 0.7853982 }
  0x29   :  { %v56_v28 = vsub.s32 32, %v55_v25  ;;  %v58_v30 = vshll.u32 %v568_v29, %v55_v25  ;;  %v61_v32 = vshll.u32 %v569_v31, %v55_v25  ;;  %v64_v34 = vshll.u32 %v570_v33, %v55_v25 }
  0x2a   :  { %v67_v36 = vshll.u32 %v571_v35, %v55_v25  ;;  %v70_v38 = vshll.u32 %v572_v37, %v55_v25  ;;  %vm73_vm2 = vcmp.lt.s32.totalorder %v54_v24, 1  ;;  %vm74_vm3 = vcmp.lt.s32.totalorder %v54_v24, 2 }
  0x2b   :  { %v57_v39 = vshrl.u32 %v568_v29, %v56_v28  ;;  %v59_v40 = vshrl.u32 %v569_v31, %v56_v28  ;;  %v62_v41 = vshrl.u32 %v570_v33, %v56_v28  ;;  %v65_v42 = vshrl.u32 %v571_v35, %v56_v28 }
  0x2c   :  { %v68_v43 = vshrl.u32 %v572_v37, %v56_v28  ;;  %v71_v45 = vshrl.u32 %v573_v44, %v56_v28  ;;  %vm75_vm4 = vcmp.lt.s32.totalorder %v54_v24, 3  ;;  %vm76_vm5 = vcmp.lt.s32.totalorder %v54_v24, 4 }
  0x2d   :  { %v60_v46 = vor.u32 %v59_v40, %v58_v30  ;;  %v63_v47 = vor.u32 %v62_v41, %v61_v32  ;;  %v66_v48 = vor.u32 %v65_v42, %v64_v34  ;;  %v158_v52 = vshrl.u32 %v157_v49, 5 }
  0x2e   :  { %v69_v50 = vor.u32 %v68_v43, %v67_v36  ;;  %v72_v51 = vor.u32 %v71_v45, %v70_v38  ;;  %v159_v53 = vand.u32 31, %v157_v49 }
  0x2f   :  { %v77_v54 = vsel %vm73_vm2, %v57_v39, %v60_v46  ;;  %v78_v55 = vsel %vm76_vm5, %v66_v48, 2102212464  ;;  %v81_v56 = vsel %vm73_vm2, %v60_v46, %v63_v47  ;;  %v85_v57 = vsel %vm73_vm2, %v63_v47, %v66_v48 }
  0x30   :  { %v79_v58 = vsel %vm75_vm4, %v63_v47, %v78_v55  ;;  %v82_v59 = vsel %vm76_vm5, %v69_v50, 920167782  ;;  %v86_v60 = vsel %vm76_vm5, %v72_v51, 1326507024  ;;  %v160_v61 = vsub.s32 32, %v159_v53 }
  0x31   :  { %v80_v62 = vsel %vm74_vm3, %v77_v54, %v79_v58  ;;  %v83_v63 = vsel %vm75_vm4, %v66_v48, %v82_v59  ;;  %v87_v0 = vsel %vm75_vm4, %v69_v50, %v86_v60  ;;  %v162_v1 = vshll.u32 %v568_v29, %v159_v53 }
  0x32   :  { %v84_v2 = vsel %vm74_vm3, %v81_v56, %v83_v63  ;;  %v88_v3 = vsel %vm74_vm3, %v85_v57, %v87_v0  ;;  %v96_v4 = vmul.u32 %v613_v26, %v80_v62  ;;  %v161_v5 = vshrl.u32 %v568_v29, %v160_v61 }
  0x33   :  { %v628_v6 = vmul.u32.u64.low %v613_v26, %v88_v3  ;;  %v629_v8 = vmul.u32.u64.high %v613_v26, %v88_v3, %v628_v6  ;;  %v632_v10 = vmul.u32.u64.low %v613_v26, %v84_v2  ;;  %v633_v12 = vmul.u32.u64.high %v613_v26, %v84_v2, %v632_v10 }
  0x34   :  { %v163_v13 = vshrl.u32 %v569_v31, %v160_v61  ;;  %v165_v15 = vshll.u32 %v569_v31, %v159_v53  ;;  %v166_v16 = vshrl.u32 %v570_v33, %v160_v61  ;;  %v168_v17 = vshll.u32 %v570_v33, %v159_v53 }
  0x35   :  { %v169_v18 = vshrl.u32 %v571_v35, %v160_v61  ;;  %v171_v19 = vshll.u32 %v571_v35, %v159_v53  ;;  %v172_v20 = vshrl.u32 %v572_v37, %v160_v61  ;;  %v174_v22 = vshll.u32 %v572_v37, %v159_v53 }
  0x36   :  { %v164_v23 = vor.u32 %v163_v13, %v162_v1  ;;  %v167_v24 = vor.u32 %v166_v16, %v165_v15  ;;  %v175_v25 = vshrl.u32 %v573_v44, %v160_v61  ;;  %vm177_vm6 = vcmp.lt.s32.totalorder %v158_v52, 1 }
  0x37   :  { %vm98_vm7 = vc.u32 %v629_v8, %v632_v10  ;;  %v99_v28 = vadd.s32 1, %v633_v12  ;;  %v170_v29 = vor.u32 %v169_v18, %v168_v17  ;;  %v193_v26 = vshll.u32 %v153_v27, 8 }
  0x38   :  { %v173_v30 = vor.u32 %v172_v20, %v171_v19  ;;  %v176_v31 = vor.u32 %v175_v25, %v174_v22  ;;  %vm178_vm8 = vcmp.lt.s32.totalorder %v158_v52, 2  ;;  %vm179_vm9 = vcmp.lt.s32.totalorder %v158_v52, 3 }
  0x39   :  { %v100_v32 = vsel %vm98_vm7, %v99_v28, %v633_v12  ;;  %vm180_vm10 = vcmp.lt.s32.totalorder %v158_v52, 4  ;;  %v181_v33 = vsel %vm177_vm6, %v161_v5, %v164_v23  ;;  %v185_v34 = vsel %vm177_vm6, %v164_v23, %v167_v24 }
  0x3a   :  { %v101_v35 = vadd.s32 %v100_v32, %v96_v4  ;;  %v182_v36 = vsel %vm180_vm10, %v170_v29, 2102212464  ;;  %v186_v37 = vsel %vm180_vm10, %v173_v30, 920167782  ;;  %v189_v38 = vsel %vm177_vm6, %v167_v24, %v170_v29 }
  0x3b   :  { %v183_v39 = vsel %vm179_vm9, %v167_v24, %v182_v36  ;;  %v187_v40 = vsel %vm179_vm9, %v170_v29, %v186_v37  ;;  %v190_v21 = vsel %vm180_vm10, %v176_v31, 1326507024  ;;  %v97_v63 = vadd.s32 %v632_v10, %v629_v8 }
  0x3c   :  { %v102_v27 = vadd.s32 536870912, %v101_v35  ;;  %v188_v41 = vsel %vm178_vm8, %v185_v34, %v187_v40  ;;  %v191_v42 = vsel %vm179_vm9, %v173_v30, %v190_v21  ;;  %v184_v43 = vsel %vm178_vm8, %v181_v33, %v183_v39 }
  0x3d   :  { %v192_v44 = vsel %vm178_vm8, %v189_v38, %v191_v42  ;;  %v646_v45 = vmul.u32.u64.low %v193_v26, %v188_v41  ;;  %v647_v46 = vmul.u32.u64.high %v193_v26, %v188_v41, %v646_v45  ;;  %v200_v51 = vmul.u32 %v193_v26, %v184_v43 }
  0x3e   :  { %v103_v47 = vshrl.u32 %v102_v27, 30  ;;  %v649_v48 = vmul.u32.u64.low %v193_v26, %v192_v44  ;;  %v650_v49 = vmul.u32.u64.high %v193_v26, %v192_v44, %v649_v48  ;;  %vm133_vm8 = vweird.f32 %v599_v7 }
  0x3f   :  { %v203_v53 = vadd.s32 1, %v647_v46 }
  0x40   :  { %v104_v50 = vshll.u32 %v103_v47, 30  ;;  %vm202_vm11 = vc.u32 %v650_v49, %v646_v45  ;;  %v127_v23 = vsub.s32 4, %v103_v47  ;;  %v201_v8 = vadd.s32 %v646_v45, %v650_v49 }
  0x41   :  { %v204_v55 = vsel %vm202_vm11, %v203_v53, %v647_v46 }
  0x42   :  { %v105_v54 = vsub.s32 %v101_v35, %v104_v50  ;;  %v205_v57 = vadd.s32 %v204_v55, %v200_v51  ;;  %v128_v30 = vsel %vm43_vm14, %v127_v23, %v103_v47 }
  0x43   :  { %v130_v35 = vsel %vm42_vm15, 0, %v128_v30 }
  0x44   :  { %v107_v56 = vsub.s32 0, %v105_v54  ;;  %v206_v58 = vadd.s32 536870912, %v205_v57  ;;  %v134_v40 = vadd.s32 3, %v130_v35  ;;  %v344_v9 = vand.u32 3, %v130_v35 }
  0x46   :  { %v478_v52 = vmin.u32 %v107_v56, %v105_v54  ;;  %v207_v60 = vshrl.u32 %v206_v58, 30  ;;  %v135_v42 = vand.u32 3, %v134_v40  ;;  %vm349_vm3 = vcmp.eq.s32.totalorder %v344_v9, 2 }
  0x47   :  { %vm346_vm5 = vcmp.eq.s32.totalorder %v344_v9, 0  ;;  %vm345_vm7 = vcmp.lt.s32.totalorder %v344_v9, 2 }
  0x48   :  { %v109_v59 = vclz %v478_v52  ;;  %v208_v62 = vshll.u32 %v207_v60, 30  ;;  %v231_v27 = vsub.s32 4, %v207_v60  ;;  %vm140_vm2 = vcmp.eq.s32.totalorder %v135_v42, 2 }
  0x49   :  { %vm137_vm4 = vcmp.eq.s32.totalorder %v135_v42, 0  ;;  %vm136_vm6 = vcmp.lt.s32.totalorder %v135_v42, 2 }
  0x4a   :  { %v479_v61 = vadd.s32 4294967294, %v109_v59  ;;  %v209_v1 = vsub.s32 %v205_v57, %v208_v62  ;;  %v232_v44 = vsel %vm147_vm0, %v231_v27, %v207_v60 }
  0x4b   :  { %v234_v48 = vsel %vm146_vm1, 0, %v232_v44 }
  0x4c   :  { %vm480_vm12 = vcmp.lt.s32.totalorder %v479_v61, 0  ;;  %v211_v5 = vsub.s32 0, %v209_v1  ;;  %v238_v53 = vadd.s32 3, %v234_v48 }
  0x4d   :  { %v112_v0 = vsel %vm480_vm12, 0, %v479_v61  ;;  %v447_v61 = vand.u32 3, %v234_v48 }
  0x4e   :  { %v113_v2 = vsub.s32 32, %v112_v0  ;;  %v114_v3 = vshll.u32 %v105_v54, %v112_v0  ;;  %v117_v4 = vsub.s32 4294967266, %v112_v0  ;;  %v482_v13 = vmin.u32 %v211_v5, %v209_v1 }
  0x4f   :  { %v239_v60 = vand.u32 3, %v238_v53  ;;  %vm452_vm10 = vcmp.eq.s32.totalorder %v447_v61, 2  ;;  %vm449_vm12 = vcmp.eq.s32.totalorder %v447_v61, 0 }
  0x50   :  { %v115_v6 = vshrl.u32 %v97_v63, %v113_v2  ;;  %v118_v12 = vadd.s32 127, %v117_v4  ;;  %v213_v17 = vclz %v482_v13 }
  0x51   :  { %vm244_vm9 = vcmp.eq.s32.totalorder %v239_v60, 2  ;;  %vm241_vm11 = vcmp.eq.s32.totalorder %v239_v60, 0 }
  0x52   :  { %v116_v15 = vor.u32 %v115_v6, %v114_v3  ;;  %v119_v16 = vshll.u32 %v118_v12, 23  ;;  %v483_v20 = vadd.s32 4294967294, %v213_v17 }
  0x54   :  { %v120_v18 = vor.u32 4788187, %v119_v16  ;;  %v123_v19 = vcvt.s32.f32 %v116_v15  ;;  %vm484_vm13 = vcmp.lt.s32.totalorder %v483_v20, 0 }
  0x55   :  { %v216_v24 = vsel %vm484_vm13, 0, %v483_v20  ;;  %vm240_vm13 = vcmp.lt.s32.totalorder %v239_v60, 2 }
  0x56   :  { %v121_v22 = vand.u32 2147483647, %v120_v18  ;;  %v217_v25 = vsub.s32 32, %v216_v24  ;;  %v218_v28 = vshll.u32 %v209_v1, %v216_v24  ;;  %v221_v29 = vsub.s32 4294967266, %v216_v24 }
  0x58   :  { %v124_v10 = vmul.f32 %v123_v19, %v121_v22  ;;  %v219_v31 = vshrl.u32 %v201_v8, %v217_v25  ;;  %v222_v32 = vadd.s32 127, %v221_v29 }
  0x5a   :  { %v125_v26 = vxor.u32 2147483648, %v124_v10  ;;  %v220_v36 = vor.u32 %v219_v31, %v218_v28  ;;  %v223_v37 = vshll.u32 %v222_v32, 23 }
  0x5c   :  { %v126_v33 = vsel %vm43_vm14, %v125_v26, %v124_v10  ;;  %v224_v38 = vor.u32 4788187, %v223_v37  ;;  %v227_v39 = vcvt.s32.f32 %v220_v36  ;;  %vm448_vm14 = vcmp.lt.s32.totalorder %v447_v61, 2 }
  0x5d   :  { %v129_v34 = vsel %vm42_vm15, %v599_v7, %v126_v33  ;;  %vm237_vm15 = vweird.f32 %v603_v11 }
  0x5e   :  { %511 = vcosq.f32 %v129_v34  ;;  %v225_v21 = vand.u32 2147483647, %v224_v38 }
  0x5f   :  { %513 = vsinq.f32 %v129_v34 }
  0x60   :  { %v228_v41 = vmul.f32 %v227_v39, %v225_v21 }
  0x62   :  { %v229_v43 = vxor.u32 2147483648, %v228_v41 }
  0x64   :  { %v230_v45 = vsel %vm147_vm0, %v229_v43, %v228_v41 }
  0x65   :  { %v233_v47 = vsel %vm146_vm1, %v603_v11, %v230_v45 }
  0x66   :  { %515 = vcosq.f32 %v233_v47 }
  0x67   :  { %517 = vsinq.f32 %v233_v47 }
  0x68   :  { %v512_v46 = vpop.eup %511 }
  0x69   :  { %v514_v49 = vpop.eup %513  ;;  %v141_v50 = vxor.u32 2147483648, %v512_v46 }
  0x6a   :  { %v138_v51 = vxor.u32 2147483648, %v514_v49 }
  0x6b   :  { %v142_v14 = vsel %vm140_vm2, %v141_v50, %v514_v49  ;;  %v351_v54 = vsel %vm349_vm3, %v141_v50, %v514_v49 }
  0x6c   :  { %v139_v55 = vsel %vm137_vm4, %v512_v46, %v138_v51  ;;  %v348_v56 = vsel %vm346_vm5, %v512_v46, %v138_v51 }
  0x6d   :  { %v143_v57 = vsel %vm136_vm6, %v139_v55, %v142_v14  ;;  %v352_v52 = vsel %vm345_vm7, %v348_v56, %v351_v54 }
  0x6e   :  { %v144_v58 = vsel %vm133_vm8, nan, %v143_v57  ;;  %v353_v59 = vsel %vm133_vm8, nan, %v352_v52 }
  0x6f   :  { %249 = vst [vmem:[#allocation5] sm:$0xff] %v144_v58  ;;  %457 = vst [vmem:[#allocation5 + $0x8] sm:$0xff] %v353_v59 }
  0x70   :  { %v516_v62 = vpop.eup %515 }
  0x71   :  { %v518_v63 = vpop.eup %517  ;;  %v245_v0 = vxor.u32 2147483648, %v516_v62 }
  0x72   :  { %v242_v7 = vxor.u32 2147483648, %v518_v63 }
  0x73   :  { %v246_v1 = vsel %vm244_vm9, %v245_v0, %v518_v63  ;;  %v454_v2 = vsel %vm452_vm10, %v245_v0, %v518_v63 }
  0x74   :  { %v243_v3 = vsel %vm241_vm11, %v516_v62, %v242_v7  ;;  %v451_v4 = vsel %vm449_vm12, %v516_v62, %v242_v7 }
  0x75   :  { %v247_v5 = vsel %vm240_vm13, %v243_v3, %v246_v1  ;;  %v455_v6 = vsel %vm448_vm14, %v451_v4, %v454_v2 }
  0x76   :  { %v248_v12 = vsel %vm237_vm15, nan, %v247_v5  ;;  %v456_v13 = vsel %vm237_vm15, nan, %v455_v6 }
  0x77   :  { %250 = vst [vmem:[#allocation5 + $0x10] sm:$0xff] %v248_v12  ;;  %458 = vst [vmem:[#allocation5 + $0x18] sm:$0xff] %v456_v13 }
  0x78   :  { %552 = shalt.err (!%p549_p12)
}
  0x79   :  { %s553_s23 = scalar_lea.hbm %s680_s1, 512 }
  0x7a   :  { %p554_p13 = scmp.ne.s32.totalorder %s680_s1, %s553_s23  ;;  %p557_p0 = scmp.lt.u32.totalorder %s553_s23, %s680_s1 }
  0x7c   :  { %p559_p1 = pnand %p557_p0, %p554_p13 }
  0x7e   :  { %562 = shalt.err (!%p559_p1)
}
  0x7f   :  { %s575_s28 = smov 256   ;;  %s576_s29 = smov 16  }
  0x80   :  { %470 = dma.vmem_to_hbm [thread:$0]  %s465_s19, 512, %s680_s1, [#allocation4], %s575_s28, %s575_s28, %s576_s29  }
  0x81   :  { %565 = dma.done.wait [#allocation4], 512  }
  0x82   :  { %566 = vsyncadd [#allocation4], 4294966784 }
  0x83   :  { %474 = vsyncpa [#allocation3], 1 }
  0x84   :  { %475 = vsyncpa [#allocation4], 1 }

</bundles_post_ra>
